<compile_context>
chip_gen: v6e
topology: v6e:2x2x1
jax: 0.10.0
libtpu: 0.0.40
codegen_flags: <defaults>
</compile_context>

<pallas_src>
import numpy as np
import jax
import jax.numpy as jnp
from jax.experimental import pallas as pl
from jax.experimental.pallas import tpu as pltpu


def _relative_depth_loss_kernel(pairs_ref, out_ref):
    # pairs_ref : (bb, 3, Npad) f32 -- lane-major rows [z_A, z_B, rel] per batch
    # out_ref   : (bb, 128)     f32 -- per-batch loss, broadcast across lanes
    p = pairs_ref[...]                                   # (bb, 3, Npad)
    z_a = p[:, 0, :]                                     # (bb, Npad)
    z_b = p[:, 1, :]
    rel = p[:, 2, :]

    pred = z_a - z_b                                     # (bb, Npad)

    # Masks from exact float relation values (PyTorch compares floats directly).
    valid = rel != 2.0
    nz_mask = jnp.logical_and(valid, rel != 0.0).astype(jnp.float32)  # ranking pairs
    z_mask = jnp.logical_and(valid, rel == 0.0).astype(jnp.float32)   # equality pairs

    # Ranking (log) loss -- numerically stable softplus(-rel * pred).
    x = -rel * pred
    softplus = jnp.maximum(x, 0.0) + jnp.log(1.0 + jnp.exp(-jnp.abs(x)))

    log_sum = jnp.sum(softplus * nz_mask, axis=-1, keepdims=True)     # (bb, 1)
    n_nz = jnp.sum(nz_mask, axis=-1, keepdims=True)                   # (bb, 1)

    # Squared loss on zero-relation pairs.
    sq_sum = jnp.sum(pred * pred * z_mask, axis=-1, keepdims=True)    # (bb, 1)
    n_z = jnp.sum(z_mask, axis=-1, keepdims=True)                     # (bb, 1)

    loss = log_sum / n_nz + sq_sum / n_z                              # (bb, 1)

    # Lane-dense, fully aligned (bb, 128) unmasked store.
    out_ref[...] = jnp.broadcast_to(loss, out_ref.shape)


def relative_depth_loss(output, x_A, y_A, x_B, y_B, ordinal_relation):
    """output: (B, 1, H, W) float; x_A/y_A/x_B/y_B: (B, N) int; rel: (B, N) float."""
    B, C, H, W = output.shape
    N = x_A.shape[1]
    assert C == 1
    HW = H * W

    # ---- wrapper-side gather (review option (a)): the kernel never touches
    # the depth map, only the 2N gathered values per batch element.
    depth_flat = output.reshape(B, HW)
    fA = x_A.astype(jnp.int32) * W + y_A.astype(jnp.int32)
    fB = x_B.astype(jnp.int32) * W + y_B.astype(jnp.int32)
    z_A = jnp.take_along_axis(depth_flat, fA, axis=1).astype(jnp.float32)  # (B, N)
    z_B = jnp.take_along_axis(depth_flat, fB, axis=1).astype(jnp.float32)  # (B, N)
    rel = ordinal_relation.astype(jnp.float32)                             # (B, N)

    # ---- pad the pair axis to a lane multiple; padded pairs are marked invalid
    # (rel = 2) so they drop out of both masks.
    n_pad = max(128, ((N + 127) // 128) * 128)
    if n_pad > N:
        dn = n_pad - N
        z_A = jnp.pad(z_A, ((0, 0), (0, dn)))
        z_B = jnp.pad(z_B, ((0, 0), (0, dn)))
        rel = jnp.pad(rel, ((0, 0), (0, dn)), constant_values=2.0)

    # ---- pick the batch block size bb (multiple of 8) and grid step count.
    # Per-step input buffer ~= bb * 8(sublane-padded 3) * n_pad * 4 bytes; keep a
    # single buffer <= ~8 MiB so 2x double-buffering fits the scoped VMEM default
    # on every chip (v5e 16 MiB, v6e/v7x 32 MiB).
    bytes_per_batch = 8 * n_pad * 4
    bb_cap = max(8, min(128, ((8 * 1024 * 1024) // bytes_per_batch) // 8 * 8))
    if B <= bb_cap:
        # >= 2 grid steps keeps both TensorCores busy on v7x; collapsing to one
        # step on 1-TC chips would only save ~0.35 us, so 2 steps is fine there too.
        num_steps = 2 if B >= 2 else 1
        bb = max(8, (pl.cdiv(B, num_steps) + 7) // 8 * 8)
    else:
        bb = bb_cap
        num_steps = pl.cdiv(B, bb)
    b_pad = bb * num_steps

    # ---- pad the batch axis; padded batches are all-invalid (rel = 2) and their
    # (NaN) per-batch losses are sliced off before the final sum.
    if b_pad > B:
        db = b_pad - B
        z_A = jnp.pad(z_A, ((0, db), (0, 0)))
        z_B = jnp.pad(z_B, ((0, db), (0, 0)))
        rel = jnp.pad(rel, ((0, db), (0, 0)), constant_values=2.0)

    # Single packed lane-major input: one DMA per grid step.
    pairs = jnp.stack([z_A, z_B, rel], axis=1)            # (b_pad, 3, n_pad) f32

    cost = pl.CostEstimate(
        flops=12 * b_pad * n_pad,
        transcendentals=2 * b_pad * n_pad,
        bytes_accessed=b_pad * 3 * n_pad * 4 + b_pad * 128 * 4,
    )

    per_batch_slab = pl.pallas_call(
        _relative_depth_loss_kernel,
        out_shape=jax.ShapeDtypeStruct((b_pad, 128), jnp.float32),
        grid_spec=pltpu.PrefetchScalarGridSpec(
            num_scalar_prefetch=0,
            grid=(num_steps,),
            in_specs=[pl.BlockSpec((bb, 3, n_pad), lambda s: (s, 0, 0))],
            out_specs=pl.BlockSpec((bb, 128), lambda s: (s, 0)),
        ),
        compiler_params=pltpu.CompilerParams(
            dimension_semantics=("parallel",),
            vmem_limit_bytes=32 * 1024 * 1024,
        ),
        cost_estimate=cost,
    )(pairs)

    per_batch = per_batch_slab[:B, 0]                     # (B,)
    return jnp.sum(per_batch) / B


def _reference_loss_np(output, x_A, y_A, x_B, y_B, rel):
    output = np.asarray(output, np.float32)
    x_A, y_A = np.asarray(x_A), np.asarray(y_A)
    x_B, y_B = np.asarray(x_B), np.asarray(y_B)
    rel = np.asarray(rel, np.float32)
    B = output.shape[0]
    total = 0.0
    for i in range(B):
        r = rel[i]
        ind = np.where(r != 2)[0]
        xa, ya, xb, yb = x_A[i][ind], y_A[i][ind], x_B[i][ind], y_B[i][ind]
        t = r[ind]
        z_a = output[i, 0][xa, ya]
        z_b = output[i, 0][xb, yb]
        pred = z_a - z_b
        log_loss = np.mean(np.log(1.0 + np.exp(-t[t != 0] * pred[t != 0])))
        sq_loss = np.mean(pred[t == 0] ** 2)
        total += log_loss + sq_loss
    return total / B


if __name__ == "__main__":
    B, H, W, N = 2, 16, 16, 8
    key = jax.random.PRNGKey(0)
    k1, k2, k3, k4, k5 = jax.random.split(key, 5)

    output = jax.random.normal(k1, (B, 1, H, W), dtype=jnp.float32)
    x_A = jax.random.randint(k2, (B, N), 0, H)
    y_A = jax.random.randint(k3, (B, N), 0, W)
    x_B = jax.random.randint(k4, (B, N), 0, H)
    y_B = jax.random.randint(k5, (B, N), 0, W)
    # ordinal relation in {-1, 0, 1, 2}; each row has both zero and nonzero valid
    # pairs so both means are well-defined (matches typical PyTorch inputs).
    ordinal_relation = jnp.array(
        [[-1, 0, 1, 0, 2, 1, -1, 0],
         [1, 0, -1, 2, 0, 1, -1, 0]], dtype=jnp.float32)

    loss = relative_depth_loss(output, x_A, y_A, x_B, y_B, ordinal_relation)
    loss = jax.block_until_ready(loss)

    ref = _reference_loss_np(output, x_A, y_A, x_B, y_B, ordinal_relation)
    if not np.allclose(np.asarray(loss), ref, rtol=1e-5, atol=1e-5):
        raise AssertionError(f"mismatch: kernel={float(loss)} ref={float(ref)}")
    print("KERNEL_OK")
</pallas_src>

<mosaic_0001>
module attributes {stable_mosaic.version = 11 : i64} {
  func.func @_relative_depth_loss_kernel(%arg0: i32, %arg1: memref<8x3x128xf32, #tpu.memory_space<vmem>>, %arg2: memref<8x128xf32, #tpu.memory_space<vmem>>) attributes {dimension_semantics = [#tpu.dimension_semantics<parallel>], iteration_bounds = array<i64: 2>, scalar_prefetch = 0 : i64, scratch_operands = 0 : i64, tpu.core_type = #tpu.core_type<tc>, window_params = [{transform_indices = @transform_0, window_bounds = array<i64: 8, 3, 128>}, {transform_indices = @transform_1, window_bounds = array<i64: 8, 128>}]} {
    %c0 = arith.constant 0 : index
    %c0_0 = arith.constant 0 : index
    %c0_1 = arith.constant 0 : index
    %0 = vector.load %arg1[%c0, %c0_0, %c0_1] : memref<8x3x128xf32, #tpu.memory_space<vmem>>, vector<8x3x128xf32>
    %1 = vector.extract_strided_slice %0 {offsets = [0, 0, 0], sizes = [8, 1, 128], strides = [1, 1, 1]} : vector<8x3x128xf32> to vector<8x1x128xf32>
    %2 = vector.shape_cast %1 : vector<8x1x128xf32> to vector<8x128xf32>
    %3 = vector.extract_strided_slice %0 {offsets = [0, 1, 0], sizes = [8, 1, 128], strides = [1, 1, 1]} : vector<8x3x128xf32> to vector<8x1x128xf32>
    %4 = vector.shape_cast %3 : vector<8x1x128xf32> to vector<8x128xf32>
    %5 = vector.extract_strided_slice %0 {offsets = [0, 2, 0], sizes = [8, 1, 128], strides = [1, 1, 1]} : vector<8x3x128xf32> to vector<8x1x128xf32>
    %6 = vector.shape_cast %5 : vector<8x1x128xf32> to vector<8x128xf32>
    %7 = arith.subf %2, %4 : vector<8x128xf32>
    %cst = arith.constant 2.000000e+00 : f32
    %8 = vector.broadcast %cst : f32 to vector<8x128xf32>
    %9 = arith.cmpf one, %6, %8 : vector<8x128xf32>
    %cst_2 = arith.constant 0.000000e+00 : f32
    %10 = vector.broadcast %cst_2 : f32 to vector<8x128xf32>
    %11 = arith.cmpf one, %6, %10 : vector<8x128xf32>
    %12 = arith.andi %9, %11 : vector<8x128xi1>
    %13 = arith.extui %12 : vector<8x128xi1> to vector<8x128xi32>
    %14 = arith.sitofp %13 : vector<8x128xi32> to vector<8x128xf32>
    %cst_3 = arith.constant 0.000000e+00 : f32
    %15 = vector.broadcast %cst_3 : f32 to vector<8x128xf32>
    %16 = arith.cmpf oeq, %6, %15 : vector<8x128xf32>
    %17 = arith.andi %9, %16 : vector<8x128xi1>
    %18 = arith.extui %17 : vector<8x128xi1> to vector<8x128xi32>
    %19 = arith.sitofp %18 : vector<8x128xi32> to vector<8x128xf32>
    %cst_4 = arith.constant 0.000000e+00 : f32
    %20 = vector.broadcast %cst_4 : f32 to vector<8x128xf32>
    %21 = arith.subf %20, %6 : vector<8x128xf32>
    %22 = arith.mulf %21, %7 : vector<8x128xf32>
    %cst_5 = arith.constant 0.000000e+00 : f32
    %23 = vector.broadcast %cst_5 : f32 to vector<8x128xf32>
    %24 = arith.maximumf %22, %23 : vector<8x128xf32>
    %25 = math.absf %22 : vector<8x128xf32>
    %cst_6 = arith.constant 0.000000e+00 : f32
    %26 = vector.broadcast %cst_6 : f32 to vector<8x128xf32>
    %27 = arith.subf %26, %25 : vector<8x128xf32>
    %28 = math.exp %27 : vector<8x128xf32>
    %cst_7 = arith.constant 1.000000e+00 : f32
    %29 = vector.broadcast %cst_7 : f32 to vector<8x128xf32>
    %30 = arith.addf %29, %28 : vector<8x128xf32>
    %31 = math.log %30 : vector<8x128xf32>
    %32 = arith.addf %24, %31 : vector<8x128xf32>
    %33 = arith.mulf %32, %14 : vector<8x128xf32>
    %cst_8 = arith.constant dense<0.000000e+00> : vector<8xf32>
    %34 = vector.multi_reduction <add>, %33, %cst_8 [1] : vector<8x128xf32> to vector<8xf32>
    %35 = vector.shape_cast %34 : vector<8xf32> to vector<8x1xf32>
    %cst_9 = arith.constant dense<0.000000e+00> : vector<8xf32>
    %36 = vector.multi_reduction <add>, %14, %cst_9 [1] : vector<8x128xf32> to vector<8xf32>
    %37 = vector.shape_cast %36 : vector<8xf32> to vector<8x1xf32>
    %38 = arith.mulf %7, %7 : vector<8x128xf32>
    %39 = arith.mulf %38, %19 : vector<8x128xf32>
    %cst_10 = arith.constant dense<0.000000e+00> : vector<8xf32>
    %40 = vector.multi_reduction <add>, %39, %cst_10 [1] : vector<8x128xf32> to vector<8xf32>
    %41 = vector.shape_cast %40 : vector<8xf32> to vector<8x1xf32>
    %cst_11 = arith.constant dense<0.000000e+00> : vector<8xf32>
    %42 = vector.multi_reduction <add>, %19, %cst_11 [1] : vector<8x128xf32> to vector<8xf32>
    %43 = vector.shape_cast %42 : vector<8xf32> to vector<8x1xf32>
    %44 = arith.divf %35, %37 : vector<8x1xf32>
    %45 = arith.divf %41, %43 : vector<8x1xf32>
    %46 = arith.addf %44, %45 : vector<8x1xf32>
    %47 = vector.shape_cast %46 : vector<8x1xf32> to vector<8x1xf32>
    %48 = vector.broadcast %47 : vector<8x1xf32> to vector<8x128xf32>
    %c0_12 = arith.constant 0 : index
    %c0_13 = arith.constant 0 : index
    %49 = vector.load %arg2[%c0_12, %c0_13] : memref<8x128xf32, #tpu.memory_space<vmem>>, vector<8x128xf32>
    tpu.vector_store %arg2[%c0_12, %c0_13], %48 {strides = array<i32>} : memref<8x128xf32, #tpu.memory_space<vmem>>, vector<8x128xf32>,
    return
  }
  func.func @transform_0(%arg0: i32) -> (i32, i32, i32) {
    %c0_i32 = arith.constant 0 : i32
    %c0_i32_0 = arith.constant 0 : i32
    %c0_i32_1 = arith.constant 0 : i32
    return %arg0, %c0_i32, %c0_i32_0 : i32, i32, i32
  }
  func.func @transform_1(%arg0: i32) -> (i32, i32) {
    %c0_i32 = arith.constant 0 : i32
    %c0_i32_0 = arith.constant 0 : i32
    return %arg0, %c0_i32 : i32, i32
  }
}

</mosaic_0001>

<bundles_post_ra>
// kernel: tpu_custom_call.1
= control target key start
LH: loop header
LB: loop body
LE: loop exit
PB: predicated region body
PF: predicated region fallthrough
CT: control target
= control target key end

     0   :  { %6 = vsyncpa [#allocation3], 0  ;;  %s1160_s0 = inlined_call_operand.vmem [shape: f32[16,3,128], index: 0, kind: input, shape index: {}]   ;;  %s1161_s1 = inlined_call_operand.hbm [shape: f32[16,128], index: 1, kind: output, shape index: {}]  }
   0x1   :  { %8 = vsyncpa [#allocation3 + $0x1], 0  ;;  %s787_s6 = smov 0   ;;  %s789_s7 = smov 0  }
   0x2   :  { %s791_s8 = smov 0   ;;  %s793_s9 = smov 0  }
   0x3 LB: > { %s808_s10 = sadd.s32 4294967295, %s772_s9   ;;  %s604_s11 = sadd.s32 4294967294, %s772_s9   ;;  %s772_s9 = sphi %s793_s9, %s1194_s9   ;;  %s768_s8 = sphi %s791_s8, %s1193_s8   ;;  %s764_s7 = sphi %s789_s7, %s1192_s7   ;;  %s760_s6 = sphi %s787_s6, %s1191_s6  }
   0x4   : > { %s812_s12 = sadd.s32 1, %s772_s9   ;;  %s47_s13 = sadd.s32 1, %s768_s8 }
   0x5   : > { %s44_s14 = ssub.s32 %s772_s9, %s812_s12  ;;  %p57_p0 = scmp.ne.s32.totalorder %s768_s8, %s764_s7 }
   0x6   : > { %p45_p1 = scmp.eq.s32.totalorder %s44_s14, 0  ;;  %p58_p2 = scmp.eq.s32.totalorder %s808_s10, 1 }
   0x7   : > { %p63_p3 = scmp.ne.s32.totalorder %s764_s7, %s760_s6  ;;  %p64_p4 = scmp.eq.s32.totalorder %s604_s11, 1 }
   0x8   : > { %s823_s15 = scalar_select %p45_p1, %s768_s8, %s47_s13  }
   0x9   : > { %p825_p5 = por %p58_p2, %p57_p0  ;;  %p829_p6 = por %p64_p4, %p63_p3 }
   0xa   : > { %p607_p7 = scmp.ge.s32.totalorder %s772_s9, 1  ;;  %p91_p8 = scmp.lt.s32.totalorder %s772_s9, 3 }
   0xc   : > { %p92_p9 = pnand %p607_p7, %p91_p8 }
   0xd   : > { %s609_s18 = sshll.u32 (!%p92_p9), %s808_s10, 3  ;;  %s108_s23 = sand.u32 (!%p92_p9), 1, %s764_s7  }
   0xe   : > { %95 = sbr.rel (%p92_p9) target bundleno = 395 (0x18b), region = 24  ;;  %p112_p10 = scmp.lt.s32.totalorder (!%p92_p9), %s609_s18, 15 }
   0xf   : > { %s608_s24 = sshll.u32 (!%p92_p9), %s108_s23, 3  ;;  %s628_s27 = sshll.u32 (!%p92_p9), %s808_s10, 7 }
  0x10   : > { %s110_s25 = scalar_lea.vmem (!%p92_p9), [#allocation2], %s608_s24  ;;  %s543_s30 = scalar_lea.hbm (!%p92_p9), %s1161_s1, %s628_s27 }
  0x11   : > { %s545_s26 = sshll.u32 (!%p92_p9), %s110_s25, 4  ;;  %s532_s2 = scalar_lea.sflag (!%p92_p9), [#allocation3], %s108_s23  ;;  %s1122_s26 = int_to_ptr.vmem [resolvable:$true] %s545_s26 }
  0x12   : > { %s712_s3 = scalar_lea.vmem (!%p92_p9), %s1122_s26, 128  ;;  %s776_s4 = smov (!%p92_p9), [#allocation2]  }
  0x13   : > { %s1196_s18 = smov (!%p112_p10, %s609_s18), 15  ;;  %vm1163_vm15 = vcmask 1047554   ;;  %v774_v14 = vmov 0.0   ;;  %p713_p11 = scmp.ne.s32.totalorder %s1122_s26, %s712_s3 }
  0x14   : > { %s610_s19 = sshll.u32 %s1196_s18, 2  ;;  %s716_s5 = sshll.u32 %s776_s4, 4  ;;  %s717_s5 = int_to_ptr.vmem [resolvable:$false] %s716_s5 }
  0x15   : > { %s839_s22 = scalar_lea.vmem %s1160_s0, %s610_s19  ;;  %p714_p12 = pnand %p713_p11, %p825_p5 }
  0x16   : > { %v842_v0 = vld [vmem:[%s839_s22 + $0x8] sm:$0x7]  ;;  %v845_v1 = vld [vmem:[%s839_s22 + $0xc] sm:$0x7]  ;;  %v848_v2 = vld [vmem:[%s839_s22 + $0x10] sm:$0x7]  ;;  %p719_p0 = scmp.lt.s32.totalorder %s1122_s26, %s717_s5 }
  0x17   : > { %v851_v3 = vld [vmem:[%s839_s22 + $0x14] sm:$0x7]  ;;  %v854_v4 = vld [vmem:[%s839_s22] sm:$0x7]  ;;  %v135_v5 = vrot.slane %v842_v0, 1  ;;  %v136_v6 = vrot.slane %v845_v1, 1  ;;  %p715_p13 = pneg %p714_p12 }
  0x18   : > { %v137_v7 = vrot.slane %v848_v2, 1  ;;  %v138_v8 = vrot.slane %v851_v3, 1  ;;  %v861_v9 = vld [vmem:[%s839_s22 + $0x4] sm:$0x7]  ;;  %vm157_vm0 = vcmp.ne.f32.partialorder %v854_v4, 2.0  ;;  %vm159_vm5 = vcmp.ne.f32.partialorder %v842_v0, 2.0 }
  0x19   : > { %v865_v10 = vsub.f32 %v842_v0, %v135_v5  ;;  %vm158_vm4 = vcmp.ne.f32.partialorder %v861_v9, 2.0  ;;  %vm160_vm6 = vcmp.ne.f32.partialorder %v845_v1, 2.0  ;;  %v871_v11 = vsub.f32 %v845_v1, %v136_v6  ;;  %v925_v32 = vld [vmem:[%s839_s22 + $0x18] sm:$0x7]  ;;  %v934_v39 = vld [vmem:[%s839_s22 + $0x1c] sm:$0x7] }
  0x1a   : > { %v874_v12 = vsub.f32 %v848_v2, %v137_v7  ;;  %vm197_vm8 = vcmp.eq.f32.partialorder %v854_v4, 0.0  ;;  %vm198_vm9 = vcmp.eq.f32.partialorder %v861_v9, 0.0  ;;  %v879_v13 = vsub.f32 %v851_v3, %v138_v8  ;;  %s718_s10 = scalar_lea.vmem %s717_s5, 256 }
  0x1b   : > { %vm161_vm11 = vcmp.ne.f32.partialorder %v848_v2, 2.0  ;;  %vm199_vm12 = vcmp.eq.f32.partialorder %v842_v0, 0.0  ;;  %vm200_vm13 = vcmp.eq.f32.partialorder %v845_v1, 0.0  ;;  %vm205_vm14 = vmand %vm157_vm0, %vm197_vm8  ;;  %vm1162_vm7 = vcmp.ne.f32.partialorder %v851_v3, 2.0  ;;  %p720_p1 = scmp.lt.s32.totalorder %s718_s10, %s712_s3 }
  0x1c   : > { %vm201_vm3 = vcmp.eq.f32.partialorder %v848_v2, 0.0  ;;  %vm202_vm2 = vcmp.eq.f32.partialorder %v851_v3, 0.0  ;;  %vm206_vm10 = vmand %vm158_vm4, %vm198_vm9  ;;  %v892_v15 = vsel %vm205_vm14, 1.0, %v774_v14  ;;  %v417_v17 = vmul.f32 %v865_v10, %v865_v10 }
  0x1d   : > { %vm207_vm1 = vmand %vm159_vm5, %vm199_vm12  ;;  %v620_v16 = vsel %vm206_vm10, 1.0, %v774_v14  ;;  %v418_v18 = vmul.f32 %v871_v11, %v871_v11  ;;  %v419_v19 = vmul.f32 %v874_v12, %v874_v12  ;;  %v908_v21 = vmul.f32 %v879_v13, %v879_v13  ;;  %p721_p2 = por %p720_p1, %p719_p0 }
  0x1e   : > { %vm208_vm8 = vmand %vm160_vm6, %vm200_vm13  ;;  %v621_v20 = vsel %vm207_vm1, 1.0, %v774_v14  ;;  %v481_v22 = vrot.slane %v620_v16, 7  ;;  %v134_v23 = vrot.slane %v861_v9, 1  ;;  %vm374_vm9 = vcmask 1041409  }
  0x1f   : > { %vm209_vm10 = vmand %vm161_vm11, %vm201_vm3  ;;  %v622_v24 = vsel %vm208_vm8, 1.0, %v774_v14  ;;  %v433_v25 = vrot.slane %v621_v20, 2  ;;  %v483_v26 = vrot.slane %v621_v20, 6  ;;  %v431_v27 = vrot.slane %v892_v15, 2  ;;  %p722_p3 = pnand %p721_p2, %p715_p13 }
  0x20   : > { %vm382_vm1 = vcmask 1041408   ;;  %vm210_vm12 = vmand %vm1162_vm7, %vm202_vm2  ;;  %v623_v28 = vsel %vm209_vm10, 1.0, %v774_v14  ;;  %v434_v29 = vrot.slane %v622_v24, 2  ;;  %vm1167_vm13 = vcmask 1043459  }
  0x21   : > { %v482_v30 = vsel %vm1167_vm13, %v481_v22, %v892_v15  ;;  %v485_v31 = vrot.slane %v622_v24, 5  ;;  %v928_v33 = vsel %vm210_vm12, 1.0, %v774_v14  ;;  %v432_v34 = vrot.slane %v620_v16, 2 }
  0x22   : > { %vm1168_vm3 = vcmask 1044484   ;;  %vm163_vm14 = vcmp.ne.f32.partialorder %v925_v32, 2.0  ;;  %v435_v36 = vrot.slane %v623_v28, 2  ;;  %vm1169_vm8 = vcmask 1045509  }
  0x23   : > { %v484_v35 = vsel %vm1168_vm3, %v483_v26, %v482_v30  ;;  %v487_v38 = vrot.slane %v623_v28, 4  ;;  %v937_v40 = vsub.f32 %v861_v9, %v134_v23  ;;  %v939_v41 = vmul.f32 %v433_v25, %v417_v17 }
  0x24   : > { %v486_v37 = vsel %vm1169_vm8, %v485_v31, %v484_v35  ;;  %v489_v42 = vrot.slane %v928_v33, 3  ;;  %vm1164_vm2 = vcmp.ne.f32.partialorder %v934_v39, 2.0  ;;  %vm203_vm10 = vcmp.eq.f32.partialorder %v925_v32, 0.0 }
  0x25   : > { %v436_v43 = vrot.slane %v928_v33, 2  ;;  %v945_v44 = vmul.f32 %v434_v29, %v418_v18  ;;  %vm1170_vm12 = vcmask 1046534   ;;  %vm204_vm13 = vcmp.eq.f32.partialorder %v934_v39, 0.0  ;;  %vm211_vm3 = vmand %vm163_vm14, %vm203_vm10 }
  0x26   : > { %v488_v45 = vsel %vm1170_vm12, %v487_v38, %v486_v37  ;;  %vm1171_vm8 = vcmask 1047559   ;;  %vm212_vm7 = vmand %vm1164_vm2, %vm204_vm13  ;;  %v955_v47 = vsel %vm211_vm3, 1.0, %v774_v14  ;;  %v416_v48 = vmul.f32 %v937_v40, %v937_v40 }
  0x27   : > { %v490_v46 = vsel %vm1171_vm8, %v489_v42, %v488_v45  ;;  %v133_v49 = vrot.slane %v854_v4, 1  ;;  %v962_v51 = vsel %vm212_vm7, 1.0, %v774_v14  ;;  %v437_v52 = vrot.slane %v955_v47, 2 }
  0x28   : > { %v495_v50 = vsel %vm1163_vm15, %v490_v46, 0.0  ;;  %vm165_vm10 = vcmp.ne.f32.partialorder %v854_v4, 0.0  ;;  %v448_v53 = vmul.f32 %v432_v34, %v416_v48  ;;  %v491_v54 = vrot.slane %v962_v51, 1 }
  0x29   : > { %496 = vadd.xlane.f32.xlu0 %v495_v50  ;;  %v149_v55 = vsub.f32 %v854_v4, %v133_v49  ;;  %vm166_vm12 = vcmp.ne.f32.partialorder %v861_v9, 0.0  ;;  %vm173_vm13 = vmand %vm157_vm0, %vm165_vm10  ;;  %v971_v56 = vmul.f32 %v435_v36, %v419_v19  ;;  %vm167_vm7 = vcmp.ne.f32.partialorder %v842_v0, 0.0 }
  0x2a   : > { %vm168_vm3 = vcmp.ne.f32.partialorder %v845_v1, 0.0  ;;  %vm169_vm8 = vcmp.ne.f32.partialorder %v848_v2, 0.0  ;;  %vm174_vm15 = vmand %vm158_vm4, %vm166_vm12  ;;  %v492_v57 = vsel %vm374_vm9, %v491_v54, %v437_v52  ;;  %vm170_vm2 = vcmp.ne.f32.partialorder %v851_v3, 0.0 }
  0x2b   : > { %v245_v58 = vrot.slane %v149_v55, 6  ;;  %v415_v59 = vmul.f32 %v149_v55, %v149_v55  ;;  %vm175_vm0 = vmand %vm159_vm5, %vm167_vm7  ;;  %v498_v60 = vsel %vm382_vm1, %v492_v57, 0.0  ;;  %v988_v61 = vsel %vm173_vm13, 1.0, %v774_v14 }
  0x2c   : > { %vm176_vm10 = vmand %vm160_vm6, %vm168_vm3  ;;  %v991_v62 = vsel %vm174_vm15, 1.0, %v774_v14  ;;  %v994_v63 = vsel %vm175_vm0, 1.0, %v774_v14  ;;  %vm466_vm4 = vcmask 1042434   ;;  %v463_v5 = vrot.slane %v448_v53, 7 }
  0x2d   : > { %499 = vadd.xlane.f32.xlu0 %v498_v60  ;;  %vm177_vm5 = vmand %vm161_vm11, %vm169_vm8  ;;  %v1001_v6 = vsel %vm176_vm10, 1.0, %v774_v14  ;;  %v229_v7 = vsub.f32 0.0, %v854_v4  ;;  %v394_v8 = vrot.slane %v991_v62, 7  ;;  %vm1172_vm6 = vcmp.ne.f32.partialorder %v851_v3, 2.0 }
  0x2e   : > { %vm178_vm15 = vmand %vm1172_vm6, %vm170_vm2  ;;  %v1008_v16 = vsel %vm177_vm5, 1.0, %v774_v14  ;;  %v396_v17 = vrot.slane %v994_v63, 6  ;;  %v398_v18 = vrot.slane %v1001_v6, 5  ;;  %vm171_vm12 = vcmp.ne.f32.partialorder %v925_v32, 0.0 }
  0x2f   : > { %v447_v19 = vmul.f32 %v431_v27, %v415_v59  ;;  %v1016_v20 = vsel %vm178_vm15, 1.0, %v774_v14  ;;  %vm1173_vm11 = vcmask 1043459   ;;  %v400_v22 = vrot.slane %v1008_v16, 4  ;;  %vm179_vm2 = vmand %vm163_vm14, %vm171_vm12 }
  0x30   : > { %v395_v4 = vsel %vm1173_vm11, %v394_v8, %v988_v61  ;;  %vm1174_vm13 = vcmask 1044484   ;;  %v402_v24 = vrot.slane %v1016_v20, 3  ;;  %v1025_v25 = vmul.f32 %v245_v58, %v229_v7  ;;  %vm1180_vm6 = vmmov %vm1173_vm11 }
  0x31   : > { %v397_v23 = vsel %vm1174_vm13, %v396_v17, %v395_v4  ;;  %vm172_vm7 = vcmp.ne.f32.partialorder %v934_v39, 0.0  ;;  %vm1175_vm3 = vcmask 1045509   ;;  %vm1176_vm8 = vcmp.ne.f32.partialorder %v934_v39, 2.0  ;;  %vm1181_vm15 = vmmov %vm1174_vm13 }
  0x32   : > { %v399_v15 = vsel %vm1175_vm3, %v398_v18, %v397_v23  ;;  %vm180_vm0 = vmand %vm1176_vm8, %vm172_vm7  ;;  %v1032_v26 = vsel %vm179_vm2, 1.0, %v774_v14  ;;  %v139_v27 = vrot.slane %v925_v32, 1  ;;  %v140_v28 = vrot.slane %v934_v39, 1 }
  0x33   : > { %v452_v29 = vmul.f32 %v436_v43, %v908_v21  ;;  %vm1177_vm14 = vcmask 1046534   ;;  %v277_v31 = vand.u32 2147483647, %v1025_v25  ;;  %v1040_v33 = vsel %vm180_vm0, 1.0, %v774_v14  ;;  %vm1187_vm2 = vmmov %vm1175_vm3 }
  0x34   : > { %v401_v30 = vsel %vm1177_vm14, %v400_v22, %v399_v15  ;;  %vm1178_vm10 = vcmask 1047559   ;;  %v404_v35 = vrot.slane %v1032_v26, 2  ;;  %v405_v36 = vrot.slane %v1040_v33, 1  ;;  %vm1183_vm12 = vmmov %vm1177_vm14 }
  0x35   : > { %v403_v34 = vsel %vm1178_vm10, %v402_v24, %v401_v30  ;;  %v155_v37 = vsub.f32 %v925_v32, %v139_v27  ;;  %v464_v38 = vsel %vm374_vm9, %v463_v5, %v447_v19  ;;  %vm1179_vm5 = vcmask 1047554   ;;  %vm1184_vm11 = vmmov %vm1178_vm10 }
  0x36   : > { %v409_v42 = vsel %vm1179_vm5, %v403_v34, 0.0  ;;  %v156_v21 = vsub.f32 %v934_v39, %v140_v28  ;;  %v438_v43 = vrot.slane %v962_v51, 2  ;;  %v285_v45 = vsub.f32 0.0, %v277_v31  ;;  %vm1189_vm7 = vmmov %vm1178_vm10 }
  0x37   : > { %410 = vadd.xlane.f32.xlu1 %v409_v42  ;;  %v406_v14 = vsel %vm374_vm9, %v405_v36, %v404_v35  ;;  %v421_v46 = vmul.f32 %v155_v37, %v155_v37  ;;  %v465_v48 = vrot.slane %v939_v41, 6  ;;  %v251_v50 = vrot.slane %v155_v37, 6 }
  0x38   : > { %v412_v49 = vsel %vm382_vm1, %v406_v14, 0.0  ;;  %v252_v53 = vrot.slane %v156_v21, 6  ;;  %v422_v54 = vmul.f32 %v156_v21, %v156_v21  ;;  %v468_v58 = vrot.slane %v945_v44, 5 }
  0x39   : > { %v453_v55 = vmul.f32 %v437_v52, %v421_v46  ;;  %v467_v57 = vsel %vm466_vm4, %v465_v48, %v464_v38  ;;  %v470_v51 = vrot.slane %v971_v56, 4  ;;  %v246_v59 = vrot.slane %v937_v40, 6  ;;  %vm1182_vm4 = vmmov %vm1175_vm3 }
  0x3a   : > { %v454_v60 = vmul.f32 %v438_v43, %v422_v54  ;;  %v472_v5 = vrot.slane %v452_v29, 3  ;;  %v235_v41 = vsub.f32 0.0, %v925_v32  ;;  %v293_v7 = vmul.f32 1.442695, %v285_v45  ;;  %vm1190_vm3 = vmmov %vm1179_vm5 }
  0x3b   : > { %413 = vadd.xlane.f32.xlu1 %v412_v49  ;;  %v469_v8 = vsel %vm1180_vm6, %v468_v58, %v467_v57  ;;  %v474_v17 = vrot.slane %v453_v55, 2  ;;  %v236_v47 = vsub.f32 0.0, %v934_v39  ;;  %v230_v44 = vsub.f32 0.0, %v861_v9 }
  0x3c   : > { %v471_v52 = vsel %vm1181_vm15, %v470_v51, %v469_v8  ;;  %v476_v18 = vrot.slane %v454_v60, 1  ;;  %v1063_v19 = vmul.f32 %v251_v50, %v235_v41  ;;  %v231_v32 = vsub.f32 0.0, %v842_v0 }
  0x3d   : > { %v473_v40 = vsel %vm1182_vm4, %v472_v5, %v471_v52  ;;  %v1067_v56 = vmul.f32 %v252_v53, %v236_v47  ;;  %v232_v4 = vsub.f32 0.0, %v845_v1  ;;  %v233_v39 = vsub.f32 0.0, %v848_v2 }
  0x3e   : > { %v475_v22 = vsel %vm1183_vm12, %v474_v17, %v473_v40  ;;  %v283_v23 = vand.u32 2147483647, %v1063_v19  ;;  %v234_v24 = vsub.f32 0.0, %v851_v3  ;;  %674 = vpow2.f32 %v293_v7 }
  0x3f   : > { %v477_v15 = vsel %vm1184_vm11, %v476_v18, %v475_v22  ;;  %v284_v9 = vand.u32 2147483647, %v1067_v56  ;;  %v247_v27 = vrot.slane %v865_v10, 6  ;;  %v248_v0 = vrot.slane %v871_v11, 6 }
  0x40   : > { %479 = vadd.xlane.f32.xlu0 %v477_v15  ;;  %v291_v28 = vsub.f32 0.0, %v283_v23  ;;  %v249_v1 = vrot.slane %v874_v12, 6  ;;  %v250_v29 = vrot.slane %v879_v13, 6  ;;  %v1081_v31 = vmul.f32 %v246_v59, %v230_v44 }
  0x41   : > { %v292_v30 = vsub.f32 0.0, %v284_v9  ;;  %v1083_v2 = vmul.f32 %v247_v27, %v231_v32  ;;  %v1085_v34 = vmul.f32 %v248_v0, %v232_v4  ;;  %v275_v32 = vmax.f32 %v1063_v19, 0.0 }
  0x42   : > { %v305_v3 = vmul.f32 1.442695, %v291_v28  ;;  %v1087_v35 = vmul.f32 %v249_v1, %v233_v39  ;;  %v1089_v36 = vmul.f32 %v250_v29, %v234_v24  ;;  %v278_v37 = vand.u32 2147483647, %v1081_v31 }
  0x43   : > { %v307_v10 = vmul.f32 1.442695, %v292_v30  ;;  %v279_v11 = vand.u32 2147483647, %v1083_v2  ;;  %v280_v12 = vand.u32 2147483647, %v1085_v34 }
  0x44   : > { %676 = vpow2.f32 %v305_v3  ;;  %v281_v13 = vand.u32 2147483647, %v1087_v35  ;;  %v282_v38 = vand.u32 2147483647, %v1089_v36  ;;  %v286_v42 = vsub.f32 0.0, %v278_v37 }
  0x45   : > { %678 = vpow2.f32 %v307_v10  ;;  %v287_v21 = vsub.f32 0.0, %v279_v11  ;;  %v288_v43 = vsub.f32 0.0, %v280_v12  ;;  %v276_v22 = vmax.f32 %v1067_v56, 0.0 }
  0x46   : > { %v289_v45 = vsub.f32 0.0, %v281_v13  ;;  %v290_v14 = vsub.f32 0.0, %v282_v38  ;;  %v295_v46 = vmul.f32 1.442695, %v286_v42  ;;  %v269_v9 = vmax.f32 %v1025_v25, 0.0 }
  0x47   : > { %v297_v48 = vmul.f32 1.442695, %v287_v21  ;;  %v299_v49 = vmul.f32 1.442695, %v288_v43  ;;  %v270_v29 = vmax.f32 %v1081_v31, 0.0  ;;  %v271_v19 = vmax.f32 %v1083_v2, 0.0 }
  0x48   : > { %v301_v50 = vmul.f32 1.442695, %v289_v45  ;;  %680 = vpow2.f32 %v295_v46  ;;  %v303_v53 = vmul.f32 1.442695, %v290_v14  ;;  %v272_v11 = vmax.f32 %v1085_v34, 0.0 }
  0x49   : > { %682 = vpow2.f32 %v297_v48  ;;  %v273_v25 = vmax.f32 %v1087_v35, 0.0  ;;  %vm507_vm8 = vcmask 1045504  }
  0x4a   : > { %684 = vpow2.f32 %v299_v49 }
  0x4b   : > { %v675_v54 = vpop.eup %674  ;;  %686 = vpow2.f32 %v301_v50 }
  0x4c   : > { %v309_v55 = vadd.f32 1.0, %v675_v54  ;;  %688 = vpow2.f32 %v303_v53 }
  0x4e   : > { %690 = vlog2.f32 %v309_v55 }
  0x51   : > { %v677_v57 = vpop.eup %676 }
  0x52   : > { %v679_v58 = vpop.eup %678  ;;  %v315_v51 = vadd.f32 1.0, %v677_v57 }
  0x53   : > { %v316_v59 = vadd.f32 1.0, %v679_v58 }
  0x54   : > { %692 = vlog2.f32 %v315_v51 }
  0x55   : > { %694 = vlog2.f32 %v316_v59  ;;  %v681_v60 = vpop.eup %680 }
  0x56   : > { %v683_v5 = vpop.eup %682  ;;  %v310_v41 = vadd.f32 1.0, %v681_v60 }
  0x57   : > { %v685_v7 = vpop.eup %684  ;;  %v311_v8 = vadd.f32 1.0, %v683_v5 }
  0x58   : > { %v687_v17 = vpop.eup %686  ;;  %v312_v47 = vadd.f32 1.0, %v685_v7  ;;  %696 = vlog2.f32 %v310_v41 }
  0x59   : > { %v689_v52 = vpop.eup %688  ;;  %v313_v18 = vadd.f32 1.0, %v687_v17  ;;  %698 = vlog2.f32 %v311_v8 }
  0x5a   : > { %v314_v44 = vadd.f32 1.0, %v689_v52  ;;  %700 = vlog2.f32 %v312_v47 }
  0x5b   : > { %702 = vlog2.f32 %v313_v18  ;;  %v691_v40 = vpop.eup %690 }
  0x5c   : > { %704 = vlog2.f32 %v314_v44  ;;  %v318_v27 = vmul.f32 0.6931472, %v691_v40 }
  0x5e   : > { %v333_v56 = vadd.f32 %v318_v27, %v269_v9 }
  0x60   : > { %v341_v46 = vmul.f32 %v988_v61, %v333_v56 }
  0x61   : > { %v693_v4 = vpop.eup %692 }
  0x62   : > { %v695_v23 = vpop.eup %694  ;;  %v330_v39 = vmul.f32 0.6931472, %v693_v4 }
  0x63   : > { %v332_v24 = vmul.f32 0.6931472, %v695_v23 }
  0x64   : > { %v339_v15 = vadd.f32 %v330_v39, %v275_v32 }
  0x65   : > { %v340_v28 = vadd.f32 %v332_v24, %v276_v22  ;;  %v697_v30 = vpop.eup %696 }
  0x66   : > { %v347_v0 = vmul.f32 %v1032_v26, %v339_v15  ;;  %v699_v10 = vpop.eup %698  ;;  %v320_v12 = vmul.f32 0.6931472, %v697_v30 }
  0x67   : > { %v348_v1 = vmul.f32 %v1040_v33, %v340_v28  ;;  %v701_v13 = vpop.eup %700  ;;  %v322_v38 = vmul.f32 0.6931472, %v699_v10  ;;  %v274_v33 = vmax.f32 %v1089_v36, 0.0 }
  0x68   : > { %v372_v3 = vrot.slane %v347_v0, 2  ;;  %v703_v42 = vpop.eup %702  ;;  %v324_v31 = vmul.f32 0.6931472, %v701_v13  ;;  %v334_v21 = vadd.f32 %v320_v12, %v270_v29 }
  0x69   : > { %v373_v37 = vrot.slane %v348_v1, 1  ;;  %v705_v43 = vpop.eup %704  ;;  %v326_v45 = vmul.f32 0.6931472, %v703_v42  ;;  %v335_v14 = vadd.f32 %v322_v38, %v271_v19 }
  0x6a   : > { %v328_v34 = vmul.f32 0.6931472, %v705_v43  ;;  %v336_v48 = vadd.f32 %v324_v31, %v272_v11  ;;  %v342_v35 = vmul.f32 %v991_v62, %v334_v21 }
  0x6b   : > { %v375_v26 = vsel %vm374_vm9, %v373_v37, %v372_v3  ;;  %v337_v49 = vadd.f32 %v326_v45, %v273_v25  ;;  %v343_v50 = vmul.f32 %v994_v63, %v335_v14  ;;  %vm1185_vm9 = vmmov %vm1180_vm6 }
  0x6c   : > { %v383_v2 = vsel %vm382_vm1, %v375_v26, 0.0  ;;  %v338_v53 = vadd.f32 %v328_v34, %v274_v33  ;;  %v344_v36 = vmul.f32 %v1001_v6, %v336_v48  ;;  %v357_v54 = vrot.slane %v342_v35, 7  ;;  %vm1186_vm1 = vmmov %vm1174_vm13 }
  0x6d   : > { %384 = vadd.xlane.f32.xlu0 %v383_v2  ;;  %v345_v55 = vmul.f32 %v1008_v16, %v337_v49  ;;  %v360_v57 = vrot.slane %v343_v50, 6  ;;  %vm1188_vm13 = vmmov %vm1183_vm12  ;;  %v775_v16 = vmov 0  }
  0x6e   : > { %v346_v58 = vmul.f32 %v1016_v20, %v338_v53  ;;  %v359_v51 = vsel %vm1185_vm9, %v357_v54, %v341_v46  ;;  %v363_v61 = vrot.slane %v344_v36, 5  ;;  %673 = vset.pattern.permute.xlu0 %v775_v16  ;;  %672 = vset.pattern.permute.xlu1 %v775_v16 }
  0x6f   : > { %v362_v59 = vsel %vm1186_vm1, %v360_v57, %v359_v51  ;;  %v366_v60 = vrot.slane %v345_v55, 4 }
  0x70   : > { %v365_v62 = vsel %vm1187_vm2, %v363_v61, %v362_v59  ;;  %v369_v5 = vrot.slane %v346_v58, 3 }
  0x71   : > { %v368_v63 = vsel %vm1188_vm13, %v366_v60, %v365_v62 }
  0x72   : > { %v371_v41 = vsel %vm1189_vm7, %v369_v5, %v368_v63 }
  0x73   : > { %v379_v6 = vsel %vm1190_vm3, %v371_v41, 0.0 }
  0x74   : > { %380 = vadd.xlane.f32.xlu1 %v379_v6 }
  0xb2   : > { %v497_v20 = vpop.xlane.xlu0 %496 }
  0xb3   : > { %v508_v8 = vrot.slane %v497_v20, 2 }
  0xb6   : > { %v500_v7 = vpop.xlane.xlu0 %499 }
  0xb7   : > { %v509_v17 = vrot.slane %v500_v7, 2 }
  0xb9   : > { %v510_v47 = vsel %vm507_vm8, %v508_v8, %v509_v17 }
  0xba   : > { %706 = vrcp.f32 %v510_v47 }
  0xc0   : > { %v411_v52 = vpop.xlane.xlu1 %410 }
  0xc4   : > { %v414_v18 = vpop.xlane.xlu1 %413 }
  0xc5   : > { %708 = vrcp.f32 %v414_v18 }
  0xc6   : > { %710 = vrcp.f32 %v411_v52 }
  0xc7   : > { %v707_v44 = vpop.eup %706 }
  0xc9   : > { %v480_v40 = vpop.xlane.xlu0 %479 }
  0xca   : > { %v513_v32 = vmul.f32 %v707_v44, %v480_v40 }
  0xcc   : > { %v515_v22 = vrot.slane %v513_v32, 6 }
  0xd2   : > { %v709_v4 = vpop.eup %708 }
  0xd3   : > { %v711_v15 = vpop.eup %710 }
  0xf6   : > { %v385_v23 = vpop.xlane.xlu0 %384 }
  0xf7   : > { %v504_v39 = vmul.f32 %v709_v4, %v385_v23 }
  0xf9   : > { %v518_v24 = vadd.f32 %v515_v22, %v504_v39 }
  0xfb   : > { %526 = vperm.xlu0 %673, %v518_v24  }
  0xfd   : > { %v381_v9 = vpop.xlane.xlu1 %380 }
  0xfe   : > { %v502_v27 = vmul.f32 %v711_v15, %v381_v9 }
 0x100   : > { %v517_v28 = vadd.f32 %v515_v22, %v502_v27 }
 0x102   : > { %521 = vperm.xlu1 %672, %v517_v28  }
 0x176   : > { %v527_v0 = vpop.permute.xlu0 %526 }
 0x177   : > { %530 = vst [vmem:[%s110_s25 + $0x6] sm:$0x3] %v527_v0 }
 0x17d   : > { %v522_v1 = vpop.permute.xlu1 %521 }
 0x17e   : > { %529 = vst [vmem:[%s110_s25 - $0x2] sm:$0xfc] %v522_v1 }
 0x17f   : > { %725 = shalt.err (!%p722_p3)
}
 0x180   : > { %s726_s11 = scalar_lea.hbm %s543_s30, 128  ;;  %s730_s18 = scalar_lea.hbm %s1161_s1, 256 }
 0x181   : > { %p727_p4 = scmp.ne.s32.totalorder %s543_s30, %s726_s11  ;;  %p731_p9 = scmp.lt.s32.totalorder %s543_s30, %s1161_s1 }
 0x182   : > { %p732_p10 = scmp.lt.s32.totalorder %s730_s18, %s726_s11 }
 0x183   : > { %p728_p7 = pnand %p727_p4, %p825_p5 }
 0x184   : > { %p733_p11 = por %p732_p10, %p731_p9 }
 0x185   : > { %p729_p8 = pneg %p728_p7 }
 0x187   : > { %p734_p12 = pnand %p733_p11, %p729_p8 }
 0x189   : > { %737 = shalt.err (!%p734_p12)
}
 0x18a   : > { %631 = dma.vmem_to_hbm [thread:$0]  (%p825_p5), %s1122_s26, 128, %s543_s30, %s532_s2  }
 0x18b PF: > { %p637_p13 = scmp.ge.s32.totalorder %s772_s9, 2  ;;  %s557_s21 = sand.u32 1, %s760_s6  }
 0x18c   : > { %s558_s22 = scalar_lea.sflag [#allocation3], %s557_s21 }
 0x18d   : > { %p634_p0 = pnand %p637_p13, %p829_p6 }
 0x18f   : > { %p635_p1 = pneg %p634_p0 }
 0x191   : > { %755 = dma.done.wait (%p635_p1), %s558_s22, 128  }
 0x192   : > { %757 = vsyncadd (%p635_p1), %s558_s22, 4294967168  ;;  %p11_p2 = scmp.ge.s32.totalorder %s812_s12, 4   ;;  %s1191_s6 = smov %s764_s7 }
 0x193   : > { %s1192_s7 = smov %s768_s8  ;;  %s1193_s8 = smov %s823_s15 }
 0x194   : > { %s1194_s9 = smov %s812_s12  ;;  %13 = sbr.rel (!%p11_p2) target bundleno = 3 (0x3), region = 59 }
 0x199   :  { %563 = vsyncpa [#allocation3], 1 }
 0x19a   :  { %565 = vsyncpa [#allocation3 + $0x1], 1 }

</bundles_post_ra>
